<compile_context>
chip_gen: v7x
topology: tpu7x:2x2x1
jax: 0.10.0
libtpu: 0.0.40
codegen_flags: <defaults>
</compile_context>

<pallas_src>
import jax
import jax.numpy as jnp
from jax.experimental import pallas as pl
from jax.experimental.pallas import tpu as pltpu

EPS = 1e-5
_LANE = 128
_SUBLANE = 8


def _round_up(x, m):
    return (x + m - 1) // m * m


def _slab_layout(state_size, h0, h1, action_size):
    """Row/lane layout of the single packed parameter slab."""
    lanes = _round_up(max(state_size, h0, h1, action_size), _LANE)
    r_w0 = 0                                 # rows [r_w0, r_w0+state): W0, h0 lanes used
    r_w1 = _round_up(state_size, _SUBLANE)   # rows [r_w1, r_w1+lanes): W1, h0 rows / h1 lanes used
    r_wo = r_w1 + lanes                      # rows [r_wo, r_wo+lanes): Wo, h1 rows / act lanes used
    r_vec = r_wo + lanes                     # rows [r_vec, r_vec+8): g_in, g0, be0, bb1, bbo
    rows = r_vec + _SUBLANE
    return dict(lanes=lanes, r_w0=r_w0, r_w1=r_w1, r_wo=r_wo, r_vec=r_vec, rows=rows)


def prepare_actor_params(params):
    """Pack every parameter into one lane-padded f32 slab.  Build ONCE, reuse."""
    state_size, h0 = params["w0"].shape
    h1 = params["w1"].shape[1]
    action_size = params["wo"].shape[1]
    L = _slab_layout(state_size, h0, h1, action_size)

    slab = jnp.zeros((L["rows"], L["lanes"]), jnp.float32)
    slab = slab.at[L["r_w0"]:L["r_w0"] + state_size, :h0].set(params["w0"])
    slab = slab.at[L["r_w1"]:L["r_w1"] + h0, :h1].set(params["w1"])
    slab = slab.at[L["r_wo"]:L["r_wo"] + h1, :action_size].set(params["wo"])
    rv = L["r_vec"]
    slab = slab.at[rv + 0, :state_size].set(params["g_in"][0])
    slab = slab.at[rv + 1, :h0].set(params["g0"][0])
    slab = slab.at[rv + 2, :h0].set(params["be0"][0])
    slab = slab.at[rv + 3, :h1].set(params["bb1"][0])
    slab = slab.at[rv + 4, :action_size].set(params["bbo"][0])
    # b_in and bb0 are intentionally NOT packed: both are per-feature constants
    # added before a BatchNorm and cancel exactly inside it.
    return {"slab": slab, "dims": (state_size, h0, h1, action_size)}


def _make_actor_kernel(state_size, h0, h1, action_size, layout, matmul_dtype):
    P = layout["lanes"]
    r_w0, r_w1, r_wo, rv = layout["r_w0"], layout["r_w1"], layout["r_wo"], layout["r_vec"]
    mm = matmul_dtype

    def kernel(x_ref, slab_ref, out_ref):
        x = x_ref[...].astype(jnp.float32)              # (B, state)
        inv_b = jnp.float32(1.0 / x.shape[0])           # static batch size

        # Static slices from the single packed slab (lane 0, sublane-aligned).
        w0 = slab_ref[r_w0:r_w0 + state_size, :]        # (state, P)
        w1 = slab_ref[r_w1:r_w1 + P, :]                 # (P, P), rows >= h0 are 0
        wo = slab_ref[r_wo:r_wo + P, :]                 # (P, P), rows >= h1 are 0
        g_in = slab_ref[rv + 0:rv + 1, :state_size]     # (1, state)
        g0 = slab_ref[rv + 1:rv + 2, :]                 # (1, P), pad lanes are 0
        be0 = slab_ref[rv + 2:rv + 3, :]                # (1, P), pad lanes are 0
        bb1 = slab_ref[rv + 3:rv + 4, :]                # (1, P), pad lanes are 0
        bbo = slab_ref[rv + 4:rv + 5, :action_size]     # (1, act)

        # --- input batch norm (training mode, biased batch statistics) ---
        # Two-pass (centered) variance: robust even for badly scaled raw states.
        # beta (b_in) dropped: cancelled exactly by the BatchNorm after Linear0.
        mu = jnp.sum(x, axis=0, keepdims=True) * inv_b
        d = x - mu
        var = jnp.sum(d * d, axis=0, keepdims=True) * inv_b
        xn = d * (g_in * jax.lax.rsqrt(var + EPS))      # (B, state), zero-mean

        # --- layer 0: Linear -> BatchNorm -> ReLU ---
        # Linear0 bias (bb0) omitted: cancelled exactly by the BatchNorm below.
        h = jnp.dot(xn.astype(mm), w0.astype(mm),
                    preferred_element_type=jnp.float32)       # (B, P)
        # xn is zero-mean per feature, so mean(h) ~ 0 and this one-pass
        # variance cannot suffer cancellation.
        s1 = jnp.sum(h, axis=0, keepdims=True)
        s2 = jnp.sum(h * h, axis=0, keepdims=True)
        mu0 = s1 * inv_b
        var0 = jnp.maximum(s2 * inv_b - mu0 * mu0, 0.0)
        scale = g0 * jax.lax.rsqrt(var0 + EPS)                # pad lanes -> 0
        shift = be0 - mu0 * scale                             # pad lanes -> 0
        h = jnp.maximum(h * scale + shift, 0.0)               # pad lanes stay 0

        # --- layer 1: Linear -> ReLU (no batch norm on the last hidden layer) ---
        h = jnp.dot(h.astype(mm), w1.astype(mm),
                    preferred_element_type=jnp.float32) + bb1
        h = jnp.maximum(h, 0.0)                               # pad lanes stay 0

        # --- output: Linear -> tanh ---
        a = jnp.dot(h.astype(mm), wo.astype(mm),
                    preferred_element_type=jnp.float32)       # (B, P)
        out_ref[...] = jnp.tanh(a[:, :action_size] + bbo).astype(out_ref.dtype)

    return kernel


def actor_forward(states, packed, *, matmul_dtype=jnp.bfloat16):
    """states: (B, state_size) f32.  packed: output of prepare_actor_params.

    matmul_dtype: operand dtype at the MXU dot call sites (accumulation is
    always f32).  bf16 is the fast path on v6e/v7x; pass jnp.float32 for
    exact f32 matmuls (e.g. on v5e, or for strict numerical checks).
    """
    B, state_size = states.shape
    s, h0, h1, action_size = packed["dims"]
    assert s == state_size, "states feature dim does not match packed params"
    layout = _slab_layout(state_size, h0, h1, action_size)
    slab = packed["slab"]

    kernel = _make_actor_kernel(state_size, h0, h1, action_size, layout, matmul_dtype)

    flops = 2 * B * (state_size * h0 + h0 * h1 + h1 * action_size)
    transcendentals = B * action_size + state_size + h0         # tanh + rsqrt
    bytes_accessed = states.size * 4 + slab.size * 4 + B * action_size * 4

    # Single grid step: all operands fit comfortably in VMEM at these sizes,
    # so tiling would only add ~0.35 us of per-step overhead per tile.
    # TODO(synk): large replay batches need a batch-tiled two-phase BN variant
    #   (stats-accumulate pass, then normalize+matmul) sized for v7x's 64 MiB
    #   VMEM, with a "parallel" batch axis only once BN stats are made global.
    return pl.pallas_call(
        kernel,
        out_shape=jax.ShapeDtypeStruct((B, action_size), jnp.float32),
        in_specs=[pl.BlockSpec(memory_space=pltpu.MemorySpace.VMEM)] * 2,
        out_specs=pl.BlockSpec(memory_space=pltpu.MemorySpace.VMEM),
        cost_estimate=pl.CostEstimate(flops=flops,
                                      transcendentals=transcendentals,
                                      bytes_accessed=bytes_accessed),
    )(states, slab)


def init_actor_params(key, state_size, action_size, hidden_units=(64, 32)):
    """Deterministic, shape-faithful init mirroring Actor.reset_parameters."""
    h0, h1 = hidden_units
    k = jax.random.split(key, 6)

    def uniform(kk, shape, lim):
        return jax.random.uniform(kk, shape, jnp.float32, -lim, lim)

    # hidden_init in the reference uses 1/sqrt(weight.size(0)) = 1/sqrt(fan_out)
    lim0 = 1.0 / jnp.sqrt(jnp.float32(h0))
    lim1 = 1.0 / jnp.sqrt(jnp.float32(h1))

    params = {
        # input BatchNorm1d(state_size): gamma=1, beta=0 (fresh init)
        "g_in": jnp.ones((1, state_size), jnp.float32),
        "b_in": jnp.zeros((1, state_size), jnp.float32),
        # Linear(state_size, h0), stored transposed (in, out)
        "w0": uniform(k[0], (state_size, h0), lim0),
        # bb0 kept for checkpoint compatibility; unused in the kernel
        # (exactly cancelled by the BatchNorm that follows Linear0).
        "bb0": uniform(k[1], (1, h0), lim0),
        # BatchNorm1d(h0)
        "g0": jnp.ones((1, h0), jnp.float32),
        "be0": jnp.zeros((1, h0), jnp.float32),
        # Linear(h0, h1)
        "w1": uniform(k[2], (h0, h1), lim1),
        "bb1": uniform(k[3], (1, h1), lim1),
        # output Linear(h1, action_size), uniform(-3e-3, 3e-3)
        "wo": uniform(k[4], (h1, action_size), 3e-3),
        "bbo": uniform(k[5], (1, action_size), 3e-3),
    }
    return params


def _actor_reference(states, params):
    """Pure-JAX reference matching PyTorch training-mode semantics exactly
    (two-pass biased variance, b_in and bb0 included)."""
    def bn(x, g, b):
        mu = jnp.mean(x, axis=0, keepdims=True)
        var = jnp.mean((x - mu) ** 2, axis=0, keepdims=True)
        return (x - mu) * jax.lax.rsqrt(var + EPS) * g + b

    x = bn(states, params["g_in"], params["b_in"])
    h = x @ params["w0"] + params["bb0"]
    h = jnp.maximum(bn(h, params["g0"], params["be0"]), 0.0)
    h = jnp.maximum(h @ params["w1"] + params["bb1"], 0.0)
    return jnp.tanh(h @ params["wo"] + params["bbo"])


if __name__ == "__main__":
    key = jax.random.PRNGKey(0)
    k_states, k_params = jax.random.split(key)

    batch, state_size, action_size = 8, 16, 4
    hidden_units = (64, 32)

    states = jax.random.normal(k_states, (batch, state_size), jnp.float32)
    params = init_actor_params(k_params, state_size, action_size, hidden_units)
    packed = prepare_actor_params(params)   # packed ONCE, outside the step loop

    ref = _actor_reference(states, params)

    # Exact path (f32 matmul operands) — strict check against the reference.
    actions_f32 = actor_forward(states, packed, matmul_dtype=jnp.float32)
    jax.block_until_ready(actions_f32)
    assert actions_f32.shape == (batch, action_size)
    assert bool(jnp.all(jnp.abs(actions_f32) <= 1.0))       # tanh output range
    assert bool(jnp.allclose(actions_f32, ref, rtol=5e-4, atol=5e-5)), (
        "f32 kernel output diverges from reference")

    # Fast path (bf16 matmul operands, f32 accumulation) — default.
    actions = actor_forward(states, packed)
    jax.block_until_ready(actions)
    assert actions.shape == (batch, action_size)
    assert bool(jnp.all(jnp.abs(actions) <= 1.0))
    assert bool(jnp.allclose(actions, ref, rtol=1e-2, atol=1e-2)), (
        "bf16 kernel output diverges from reference")

    print("KERNEL_OK")
</pallas_src>

<mosaic_0001>
module attributes {stable_mosaic.version = 11 : i64} {
  func.func @kernel(%arg0: memref<8x16xf32, #tpu.memory_space<vmem>>, %arg1: memref<280x128xf32, #tpu.memory_space<vmem>>, %arg2: memref<8x4xf32, #tpu.memory_space<vmem>>) attributes {dimension_semantics = [], scalar_prefetch = 0 : i64, scratch_operands = 0 : i64, tpu.core_type = #tpu.core_type<tc>} {
    %c0 = arith.constant 0 : index
    %c0_0 = arith.constant 0 : index
    %0 = vector.load %arg0[%c0, %c0_0] : memref<8x16xf32, #tpu.memory_space<vmem>>, vector<8x16xf32>
    %c0_1 = arith.constant 0 : index
    %c0_2 = arith.constant 0 : index
    %1 = vector.load %arg1[%c0_1, %c0_2] : memref<280x128xf32, #tpu.memory_space<vmem>>, vector<16x128xf32>
    %c16 = arith.constant 16 : index
    %c0_3 = arith.constant 0 : index
    %2 = vector.load %arg1[%c16, %c0_3] : memref<280x128xf32, #tpu.memory_space<vmem>>, vector<128x128xf32>
    %c144 = arith.constant 144 : index
    %c0_4 = arith.constant 0 : index
    %3 = vector.load %arg1[%c144, %c0_4] : memref<280x128xf32, #tpu.memory_space<vmem>>, vector<128x128xf32>
    %c272 = arith.constant 272 : index
    %c0_5 = arith.constant 0 : index
    %4 = vector.load %arg1[%c272, %c0_5] : memref<280x128xf32, #tpu.memory_space<vmem>>, vector<1x16xf32>
    %c273 = arith.constant 273 : index
    %c0_6 = arith.constant 0 : index
    %5 = vector.load %arg1[%c273, %c0_6] : memref<280x128xf32, #tpu.memory_space<vmem>>, vector<1x128xf32>
    %c274 = arith.constant 274 : index
    %c0_7 = arith.constant 0 : index
    %6 = vector.load %arg1[%c274, %c0_7] : memref<280x128xf32, #tpu.memory_space<vmem>>, vector<1x128xf32>
    %c275 = arith.constant 275 : index
    %c0_8 = arith.constant 0 : index
    %7 = vector.load %arg1[%c275, %c0_8] : memref<280x128xf32, #tpu.memory_space<vmem>>, vector<1x128xf32>
    %c276 = arith.constant 276 : index
    %c0_9 = arith.constant 0 : index
    %8 = vector.load %arg1[%c276, %c0_9] : memref<280x128xf32, #tpu.memory_space<vmem>>, vector<1x4xf32>
    %cst = arith.constant dense<0.000000e+00> : vector<16xf32>
    %9 = vector.multi_reduction <add>, %0, %cst [0] : vector<8x16xf32> to vector<16xf32>
    %10 = vector.shape_cast %9 : vector<16xf32> to vector<1x16xf32>
    %cst_10 = arith.constant 1.250000e-01 : f32
    %11 = vector.broadcast %cst_10 : f32 to vector<1x16xf32>
    %12 = arith.mulf %10, %11 : vector<1x16xf32>
    %13 = vector.broadcast %12 : vector<1x16xf32> to vector<8x16xf32>
    %14 = arith.subf %0, %13 : vector<8x16xf32>
    %15 = arith.mulf %14, %14 : vector<8x16xf32>
    %cst_11 = arith.constant dense<0.000000e+00> : vector<16xf32>
    %16 = vector.multi_reduction <add>, %15, %cst_11 [0] : vector<8x16xf32> to vector<16xf32>
    %17 = vector.shape_cast %16 : vector<16xf32> to vector<1x16xf32>
    %cst_12 = arith.constant 1.250000e-01 : f32
    %18 = vector.broadcast %cst_12 : f32 to vector<1x16xf32>
    %19 = arith.mulf %17, %18 : vector<1x16xf32>
    %cst_13 = arith.constant 9.99999974E-6 : f32
    %20 = vector.broadcast %cst_13 : f32 to vector<1x16xf32>
    %21 = arith.addf %19, %20 : vector<1x16xf32>
    %22 = math.rsqrt %21 : vector<1x16xf32>
    %23 = arith.mulf %4, %22 : vector<1x16xf32>
    %24 = vector.broadcast %23 : vector<1x16xf32> to vector<8x16xf32>
    %25 = arith.mulf %14, %24 : vector<8x16xf32>
    %cst_14 = arith.constant dense<0.000000e+00> : vector<8x128xf32>
    %26 = tpu.matmul %25, %1, %cst_14 {dimension_numbers = #tpu.dot_dimension_numbers<[1], [0], [0], [1], [0, 0, 1, 1], [], []>} : vector<8x16xf32>, vector<16x128xf32>, vector<8x128xf32> -> vector<8x128xf32>
    %cst_15 = arith.constant dense<0.000000e+00> : vector<128xf32>
    %27 = vector.multi_reduction <add>, %26, %cst_15 [0] : vector<8x128xf32> to vector<128xf32>
    %28 = vector.shape_cast %27 : vector<128xf32> to vector<1x128xf32>
    %29 = arith.mulf %26, %26 : vector<8x128xf32>
    %cst_16 = arith.constant dense<0.000000e+00> : vector<128xf32>
    %30 = vector.multi_reduction <add>, %29, %cst_16 [0] : vector<8x128xf32> to vector<128xf32>
    %31 = vector.shape_cast %30 : vector<128xf32> to vector<1x128xf32>
    %cst_17 = arith.constant 1.250000e-01 : f32
    %32 = vector.broadcast %cst_17 : f32 to vector<1x128xf32>
    %33 = arith.mulf %28, %32 : vector<1x128xf32>
    %cst_18 = arith.constant 1.250000e-01 : f32
    %34 = vector.broadcast %cst_18 : f32 to vector<1x128xf32>
    %35 = arith.mulf %31, %34 : vector<1x128xf32>
    %36 = arith.mulf %33, %33 : vector<1x128xf32>
    %37 = arith.subf %35, %36 : vector<1x128xf32>
    %cst_19 = arith.constant 0.000000e+00 : f32
    %38 = vector.broadcast %cst_19 : f32 to vector<1x128xf32>
    %39 = arith.maximumf %37, %38 : vector<1x128xf32>
    %cst_20 = arith.constant 9.99999974E-6 : f32
    %40 = vector.broadcast %cst_20 : f32 to vector<1x128xf32>
    %41 = arith.addf %39, %40 : vector<1x128xf32>
    %42 = math.rsqrt %41 : vector<1x128xf32>
    %43 = arith.mulf %5, %42 : vector<1x128xf32>
    %44 = arith.mulf %33, %43 : vector<1x128xf32>
    %45 = arith.subf %6, %44 : vector<1x128xf32>
    %46 = vector.broadcast %43 : vector<1x128xf32> to vector<8x128xf32>
    %47 = arith.mulf %26, %46 : vector<8x128xf32>
    %48 = vector.broadcast %45 : vector<1x128xf32> to vector<8x128xf32>
    %49 = arith.addf %47, %48 : vector<8x128xf32>
    %cst_21 = arith.constant 0.000000e+00 : f32
    %50 = vector.broadcast %cst_21 : f32 to vector<8x128xf32>
    %51 = arith.maximumf %49, %50 : vector<8x128xf32>
    %cst_22 = arith.constant dense<0.000000e+00> : vector<8x128xf32>
    %52 = tpu.matmul %51, %2, %cst_22 {dimension_numbers = #tpu.dot_dimension_numbers<[1], [0], [0], [1], [0, 0, 1, 1], [], []>} : vector<8x128xf32>, vector<128x128xf32>, vector<8x128xf32> -> vector<8x128xf32>
    %53 = vector.broadcast %7 : vector<1x128xf32> to vector<8x128xf32>
    %54 = arith.addf %52, %53 : vector<8x128xf32>
    %cst_23 = arith.constant 0.000000e+00 : f32
    %55 = vector.broadcast %cst_23 : f32 to vector<8x128xf32>
    %56 = arith.maximumf %54, %55 : vector<8x128xf32>
    %cst_24 = arith.constant dense<0.000000e+00> : vector<8x128xf32>
    %57 = tpu.matmul %56, %3, %cst_24 {dimension_numbers = #tpu.dot_dimension_numbers<[1], [0], [0], [1], [0, 0, 1, 1], [], []>} : vector<8x128xf32>, vector<128x128xf32>, vector<8x128xf32> -> vector<8x128xf32>
    %58 = vector.extract_strided_slice %57 {offsets = [0, 0], sizes = [8, 4], strides = [1, 1]} : vector<8x128xf32> to vector<8x4xf32>
    %59 = vector.broadcast %8 : vector<1x4xf32> to vector<8x4xf32>
    %60 = arith.addf %58, %59 : vector<8x4xf32>
    %61 = math.tanh %60 : vector<8x4xf32>
    %c0_25 = arith.constant 0 : index
    %c0_26 = arith.constant 0 : index
    %62 = vector.load %arg2[%c0_25, %c0_26] : memref<8x4xf32, #tpu.memory_space<vmem>>, vector<8x4xf32>
    tpu.vector_store %arg2[%c0_25, %c0_26], %61 {strides = array<i32>} : memref<8x4xf32, #tpu.memory_space<vmem>>, vector<8x4xf32>,
    return
  }
}

</mosaic_0001>

<bundles_post_ra>
// kernel: tpu_custom_call.1
= control target key start
LH: loop header
LB: loop body
LE: loop exit
PB: predicated region body
PF: predicated region fallthrough
CT: control target
= control target key end

     0   :  { %7 = vsyncpa [#allocation3], 0  ;;  %s683_s0 = inlined_call_operand.hbm [shape: f32[8,16], index: 0, kind: input, shape index: {}]   ;;  %s684_s1 = inlined_call_operand.hbm [shape: f32[280,128], index: 1, kind: input, shape index: {}]   ;;  %s685_s2 = inlined_call_operand.vmem [shape: f32[8,4], index: 2, kind: output, shape index: {}]  }
   0x1   :  { %8 = vsyncpa [#allocation5], 0  ;;  %s599_s9 = smov [#allocation2]   ;;  %s600_s11 = smov [#allocation4]  }
   0x2   :  { %s15_s10 = sshll.u32 %s599_s9, 4  ;;  %s24_s12 = sshll.u32 %s600_s11, 4  ;;  %s16_s10 = int_to_ptr.vmem [resolvable:$true] %s15_s10  ;;  %s621_s12 = int_to_ptr.vmem [resolvable:$true] %s24_s12 }
   0x3   :  { %s551_s15 = scalar_lea.hbm %s683_s0, 128 }
   0x4   :  { %p552_p0 = scmp.ne.s32.totalorder %s683_s0, %s551_s15  ;;  %p555_p1 = scmp.lt.u32.totalorder %s551_s15, %s683_s0 }
   0x6   :  { %p557_p2 = pnand %p555_p1, %p552_p0 }
   0x8   :  { %560 = shalt.err (!%p557_p2)
}
   0x9   :  { %s561_s20 = scalar_lea.vmem %s16_s10, 128  ;;  %p566_p4 = scmp.lt.s32.totalorder %s16_s10, %s16_s10 }
   0xa   :  { %p562_p3 = scmp.ne.s32.totalorder %s16_s10, %s561_s20  ;;  %p567_p5 = scmp.lt.s32.totalorder %s561_s20, %s561_s20 }
   0xc   :  { %p568_p6 = por %p567_p5, %p566_p4 }
   0xe   :  { %p569_p7 = pnand %p568_p6, %p562_p3 }
  0x10   :  { %572 = shalt.err (!%p569_p7)
}
  0x11   :  { %18 = dma.hbm_to_vmem [thread:$0]  %s683_s0, 128, %s16_s10, [#allocation3]  }
  0x12   :  { %s573_s25 = scalar_lea.hbm %s684_s1, 4480 }
  0x13   :  { %p574_p8 = scmp.ne.s32.totalorder %s684_s1, %s573_s25  ;;  %p577_p9 = scmp.lt.u32.totalorder %s573_s25, %s684_s1 }
  0x15   :  { %p579_p10 = pnand %p577_p9, %p574_p8 }
  0x17   :  { %582 = shalt.err (!%p579_p10)
}
  0x18   :  { %s583_s30 = scalar_lea.vmem %s621_s12, 4480  ;;  %p588_p12 = scmp.lt.s32.totalorder %s621_s12, %s621_s12 }
  0x19   :  { %p584_p11 = scmp.ne.s32.totalorder %s621_s12, %s583_s30  ;;  %p589_p13 = scmp.lt.s32.totalorder %s583_s30, %s583_s30 }
  0x1b   :  { %p590_p0 = por %p589_p13, %p588_p12 }
  0x1d   :  { %p591_p1 = pnand %p590_p0, %p584_p11 }
  0x1f   :  { %594 = shalt.err (!%p591_p1)
}
  0x20   :  { %s601_s0 = smov 128   ;;  %s602_s3 = smov 8  }
  0x21   :  { %30 = dma.hbm_to_vmem [thread:$0]  %s684_s1, 4480, %s621_s12, [#allocation5], %s601_s0, %s601_s0, %s602_s3  }
  0x22   :  { %595 = dma.done.wait [#allocation3], 128  }
  0x23   :  { %596 = vsyncadd [#allocation3], 4294967168 }
  0x24   :  { %597 = dma.done.wait [#allocation5], 4480  }
  0x25   :  { %598 = vsyncadd [#allocation5], 4294962816  ;;  %v603_v0 = vmov 0.0|0.0   ;;  %vm604_vm0 = vmmov 0   ;;  %v605_v1 = vmov 0.0   ;;  %vm77_vm1 = vcmask 130048  }
  0x26   :  { %487 = vmatprep.subr.bf16.mxu0 %v603_v0  ;;  %414 = vmatprep.mubr.msk.f32.mxu0 %vm604_vm0, %v605_v1  ;;  %v38_v2 = vld [vmem:[#allocation4] sm:$0xff]  ;;  %v39_v3 = vld [vmem:[#allocation4 + $0x8] sm:$0xff]  ;;  %v37_v4 = vld [vmem:[#allocation2] sm:$0xff]  ;;  %v99_v25 = vlaneseq  ;;  %vm362_vm2 = vcmask 31744  }
  0x27   :  { %490 = vmatprep.subr.bf16.mxu1 %v603_v0  ;;  %449 = vmatprep.mubr.msk.f32.mxu1 %vm604_vm0, %v605_v1  ;;  %v488_v5 = vpack.c.bf16 %v39_v3, %v38_v2  ;;  %v78_v6 = vsel %vm77_vm1, %v37_v4, 0.0  ;;  %v72_v27 = vld [vmem:[#allocation4 + $0x110] sm:$0x1]  ;;  %v41_v34 = vld [vmem:[#allocation4 + $0x18] sm:$0xff]  ;;  %v42_v36 = vld [vmem:[#allocation4 + $0x20] sm:$0xff] }
  0x28   :  { %v79_v7 = vrot.slane %v78_v6, 4  ;;  %v100_v26 = vshrl.u32 %v99_v25, 7  ;;  %v40_v33 = vld [vmem:[#allocation4 + $0x10] sm:$0xff]  ;;  %v43_v37 = vld [vmem:[#allocation4 + $0x28] sm:$0xff]  ;;  %v45_v40 = vld [vmem:[#allocation4 + $0x38] sm:$0xff] }
  0x29   :  { %489 = vmatpush3.bf16.msra.mxu0 %v488_v5  ;;  %v491_v35 = vpack.c.bf16 %v41_v34, %v40_v33  ;;  %v494_v38 = vpack.c.bf16 %v43_v37, %v42_v36  ;;  %v44_v39 = vld [vmem:[#allocation4 + $0x30] sm:$0xff]  ;;  %v46_v42 = vld [vmem:[#allocation4 + $0x40] sm:$0xff]  ;;  %v47_v43 = vld [vmem:[#allocation4 + $0x48] sm:$0xff] }
  0x2a   :  { %v80_v8 = vadd.f32 %v79_v7, %v78_v6  ;;  %514 = vmatprep.subr.bf16.mxu0 %v603_v0  ;;  %v659_v28 = vsub.s32 0, %v100_v26  ;;  %v497_v41 = vpack.c.bf16 %v45_v40, %v44_v39  ;;  %v500_v44 = vpack.c.bf16 %v47_v43, %v46_v42  ;;  %v48_v45 = vld [vmem:[#allocation4 + $0x50] sm:$0xff]  ;;  %v49_v46 = vld [vmem:[#allocation4 + $0x58] sm:$0xff]  ;;  %v50_v48 = vld [vmem:[#allocation4 + $0x60] sm:$0xff] }
  0x2b   :  { %492 = vmatpush3.bf16.msra.mxu1 %v491_v35  ;;  %v503_v47 = vpack.c.bf16 %v49_v46, %v48_v45  ;;  %v51_v49 = vld [vmem:[#allocation4 + $0x68] sm:$0xff]  ;;  %v52_v51 = vld [vmem:[#allocation4 + $0x70] sm:$0xff]  ;;  %v53_v52 = vld [vmem:[#allocation4 + $0x78] sm:$0xff] }
  0x2c   :  { %v81_v9 = vrot.slane %v80_v8, 2  ;;  %493 = vmatprep.subr.bf16.mxu1 %v603_v0  ;;  %v506_v50 = vpack.c.bf16 %v51_v49, %v50_v48  ;;  %v509_v53 = vpack.c.bf16 %v53_v52, %v52_v51  ;;  %v54_v54 = vld [vmem:[#allocation4 + $0x80] sm:$0xff]  ;;  %v55_v55 = vld [vmem:[#allocation4 + $0x88] sm:$0xff]  ;;  %v56_v57 = vld [vmem:[#allocation4 + $0x90] sm:$0xff] }
  0x2d   :  { %v512_v56 = vpack.c.bf16 %v55_v55, %v54_v54  ;;  %v57_v58 = vld [vmem:[#allocation4 + $0x98] sm:$0xff]  ;;  %v58_v59 = vld [vmem:[#allocation4 + $0xa0] sm:$0xff]  ;;  %v59_v61 = vld [vmem:[#allocation4 + $0xa8] sm:$0xff] }
  0x2e   :  { %v82_v10 = vadd.f32 %v81_v9, %v80_v8  ;;  %v515_v60 = vpack.c.bf16 %v57_v58, %v56_v57  ;;  %v518_v62 = vpack.c.bf16 %v59_v61, %v58_v59  ;;  %v60_v63 = vld [vmem:[#allocation4 + $0xb0] sm:$0xff]  ;;  %v62_v3 = vld [vmem:[#allocation4 + $0xc0] sm:$0xff]  ;;  %v65_v7 = vld [vmem:[#allocation4 + $0xd8] sm:$0xff] }
  0x2f   :  { %495 = vmatpush3.bf16.msra.mxu1 %v494_v38  ;;  %v64_v6 = vld [vmem:[#allocation4 + $0xd0] sm:$0xff]  ;;  %v66_v9 = vld [vmem:[#allocation4 + $0xe0] sm:$0xff]  ;;  %v71_v48 = vld [vmem:[#allocation4 + $0x108] sm:$0xff] }
  0x30   :  { %v83_v11 = vrot.slane %v82_v10, 1  ;;  %496 = vmatprep.subr.bf16.mxu1 %v603_v0  ;;  %v527_v8 = vpack.c.bf16 %v65_v7, %v64_v6  ;;  %v73_v36 = vld [vmem:[#allocation4 + $0x111] sm:$0x1]  ;;  %v74_v39 = vld [vmem:[#allocation4 + $0x112] sm:$0x1] }
  0x31   :  { %v372_v55 = vld [vmem:[#allocation4 + $0x114] ss:$0 sm:$0xff] }
  0x32   :  { %v84_v12 = vadd.f32 %v83_v11, %v82_v10  ;;  %v67_v10 = vld [vmem:[#allocation4 + $0xe8] sm:$0xff] }
  0x33   :  { %498 = vmatpush3.bf16.msra.mxu1 %v497_v41  ;;  %v530_v11 = vpack.c.bf16 %v67_v10, %v66_v9 }
  0x34   :  { %v85_v13 = vmul.f32 0.125, %v84_v12  ;;  %499 = vmatprep.subr.bf16.mxu1 %v603_v0  ;;  %v68_v12 = vld [vmem:[#allocation4 + $0xf0] sm:$0xff] }
  0x36   :  { %v86_v14 = vsub.f32 %v37_v4, %v85_v13  ;;  %v63_v4 = vld [vmem:[#allocation4 + $0xc8] sm:$0xff]  ;;  %v69_v13 = vld [vmem:[#allocation4 + $0xf8] sm:$0xff] }
  0x37   :  { %501 = vmatpush3.bf16.msra.mxu1 %v500_v44  ;;  %v524_v5 = vpack.c.bf16 %v63_v4, %v62_v3 }
  0x38   :  { %v87_v15 = vmul.f32 %v86_v14, %v86_v14  ;;  %502 = vmatprep.subr.bf16.mxu1 %v603_v0 }
  0x3a   :  { %v88_v16 = vsel %vm77_vm1, %v87_v15, 0.0 }
  0x3b   :  { %v89_v17 = vrot.slane %v88_v16, 4  ;;  %504 = vmatpush3.bf16.msra.mxu1 %v503_v47  ;;  %v70_v47 = vld [vmem:[#allocation4 + $0x100] sm:$0xff] }
  0x3c   :  { %505 = vmatprep.subr.bf16.mxu1 %v603_v0  ;;  %v536_v49 = vpack.c.bf16 %v71_v48, %v70_v47 }
  0x3d   :  { %v90_v18 = vadd.f32 %v89_v17, %v88_v16 }
  0x3f   :  { %v91_v19 = vrot.slane %v90_v18, 2  ;;  %507 = vmatpush3.bf16.msra.mxu1 %v506_v50  ;;  %v371_v50 = vld [vmem:[#allocation4 + $0x113] ss:$0 sm:$0xff] }
  0x40   :  { %508 = vmatprep.subr.bf16.mxu1 %v603_v0 }
  0x41   :  { %v92_v20 = vadd.f32 %v91_v19, %v90_v18 }
  0x43   :  { %v93_v21 = vrot.slane %v92_v20, 1  ;;  %510 = vmatpush3.bf16.msra.mxu1 %v509_v53 }
  0x44   :  { %511 = vmatprep.subr.bf16.mxu1 %v603_v0 }
  0x45   :  { %v94_v22 = vadd.f32 %v93_v21, %v92_v20 }
  0x47   :  { %v95_v23 = vmul.f32 0.125, %v94_v22  ;;  %513 = vmatpush3.bf16.msra.mxu1 %v512_v56 }
  0x49   :  { %v96_v24 = vadd.f32 1e-05, %v95_v23 }
  0x4b   :  { %545 = vrsqrt.f32 %v96_v24 }
  0x55   :  { %v546_v29 = vpop.eup %545 }
  0x56   :  { %v98_v30 = vmul.f32 %v546_v29, %v72_v27 }
  0x58   :  { %v102_v31 = vrot.slane %v98_v30, %v659_v28 }
  0x5a   :  { %v103_v32 = vmul.f32 %v102_v31, %v86_v14  ;;  %v533_v14 = vpack.c.bf16 %v69_v13, %v68_v12 }
  0x5c   :  { %415 = vmatmul.mubr.msk.f32.vlgmr.msra.gmra.mrb[0].mxu0 %vm77_vm1, %v103_v32 }
  0x5d   :  { %484 = vmatprep.mubr.msk.f32.mxu0 %vm604_vm0, %v605_v1  ;;  %516 = vmatpush3.bf16.msra.mxu0 %v515_v60  ;;  %v61_v1 = vld [vmem:[#allocation4 + $0xb8] sm:$0xff] }
  0x5e   :  { %517 = vmatprep.subr.bf16.mxu0 %v603_v0  ;;  %v521_v2 = vpack.c.bf16 %v61_v1, %v60_v63 }
  0x61   :  { %519 = vmatpush3.bf16.msra.mxu0 %v518_v62 }
  0x62   :  { %520 = vmatprep.subr.bf16.mxu0 %v603_v0 }
  0x65   :  { %522 = vmatpush3.bf16.msra.mxu0 %v521_v2 }
  0x66   :  { %523 = vmatprep.subr.bf16.mxu0 %v603_v0 }
  0x69   :  { %525 = vmatpush3.bf16.msra.mxu0 %v524_v5 }
  0x6a   :  { %526 = vmatprep.subr.bf16.mxu0 %v603_v0 }
  0x6d   :  { %528 = vmatpush3.bf16.msra.mxu0 %v527_v8 }
  0x6e   :  { %529 = vmatprep.subr.bf16.mxu0 %v603_v0 }
  0x71   :  { %531 = vmatpush3.bf16.msra.mxu0 %v530_v11 }
  0x72   :  { %532 = vmatprep.subr.bf16.mxu0 %v603_v0 }
  0x75   :  { %534 = vmatpush3.bf16.msra.mxu0 %v533_v14 }
  0x76   :  { %535 = vmatprep.subr.bf16.mxu0 %v603_v0 }
  0x79   :  { %537 = vmatpush3.bf16.msra.mxu0 %v536_v49 }
 0x12f   :  { %v173_v15 = vpop.f32.mrb[0].mxu0 }
 0x130   :  { %v177_v16 = vrot.slane %v173_v15, 4  ;;  %v183_v17 = vmul.f32 %v173_v15, %v173_v15  ;;  %v416_v18 = vpop.f32.mrb[1].mxu0 }
 0x132   :  { %v178_v19 = vadd.f32 %v177_v16, %v173_v15  ;;  %v184_v20 = vrot.slane %v183_v17, 4 }
 0x134   :  { %v179_v21 = vrot.slane %v178_v19, 2  ;;  %v185_v22 = vadd.f32 %v184_v20, %v183_v17 }
 0x136   :  { %v180_v23 = vadd.f32 %v179_v21, %v178_v19  ;;  %v186_v24 = vrot.slane %v185_v22, 2 }
 0x138   :  { %v181_v25 = vrot.slane %v180_v23, 1  ;;  %v187_v26 = vadd.f32 %v186_v24, %v185_v22 }
 0x13a   :  { %v182_v27 = vadd.f32 %v181_v25, %v180_v23  ;;  %v188_v29 = vrot.slane %v187_v26, 1 }
 0x13c   :  { %v189_v30 = vadd.f32 %v188_v29, %v187_v26  ;;  %v190_v31 = vmul.f32 0.125, %v182_v27 }
 0x13e   :  { %v191_v32 = vmul.f32 0.125, %v189_v30  ;;  %v192_v33 = vmul.f32 %v190_v31, %v190_v31 }
 0x140   :  { %v193_v34 = vsub.f32 %v191_v32, %v192_v33 }
 0x142   :  { %v194_v0 = vmax.f32 %v193_v34, 0.0 }
 0x144   :  { %v195_v35 = vadd.f32 1e-05, %v194_v0 }
 0x146   :  { %547 = vrsqrt.f32 %v195_v35 }
 0x150   :  { %v548_v37 = vpop.eup %547 }
 0x151   :  { %v197_v38 = vmul.f32 %v548_v37, %v73_v36 }
 0x153   :  { %v203_v40 = vrot.slane %v197_v38, %v659_v28  ;;  %v198_v41 = vmul.f32 %v197_v38, %v190_v31 }
 0x155   :  { %v199_v42 = vsub.f32 %v74_v39, %v198_v41  ;;  %v204_v43 = vmul.f32 %v203_v40, %v173_v15 }
 0x157   :  { %v208_v44 = vrot.slane %v199_v42, %v659_v28 }
 0x159   :  { %v209_v45 = vadd.f32 %v208_v44, %v204_v43 }
 0x15b   :  { %v210_v46 = vmax.f32 %v209_v45, 0.0 }
 0x15d   :  { %450 = vmatmul.mubr.f32.vlgmr.msra.gmra.mrb[0].mxu1 %v210_v46 }
 0x230   :  { %v281_v51 = vpop.f32.mrb[0].mxu1 }
 0x231   :  { %v282_v52 = vadd.f32 %v371_v50, %v281_v51  ;;  %v451_v53 = vpop.f32.mrb[1].mxu1 }
 0x233   :  { %v285_v54 = vmax.f32 %v282_v52, 0.0 }
 0x235   :  { %485 = vmatmul.mubr.f32.vlgmr.msra.gmra.mrb[2].mxu0 %v285_v54 }
 0x308   :  { %v352_v56 = vpop.f32.mrb[2].mxu0 }
 0x309   :  { %v360_v57 = vadd.f32 %v372_v55, %v352_v56  ;;  %v486_v58 = vpop.f32.mrb[3].mxu0 }
 0x30b   :  { %549 = vtanh.f32 %v360_v57 }
 0x315   :  { %v550_v28 = vpop.eup %549 }
 0x316   :  { %363 = vst.msk [vmem:[%s685_s2] sm:$0xff] %vm362_vm2, %v550_v28 }
 0x317   :  { %368 = vsyncpa [#allocation3], 1 }
 0x318   :  { %369 = vsyncpa [#allocation5], 1 }

</bundles_post_ra>
